<compile_context>
chip_gen: v6e
topology: v6e:2x2x1
jax: 0.10.0
libtpu: 0.0.40
codegen_flags: <defaults>
</compile_context>

<pallas_src>
import functools

import jax
import jax.numpy as jnp
from jax import lax
from jax.experimental import pallas as pl
from jax.experimental.pallas import tpu as pltpu


def _cross_attn_kernel(x_ref, wqkv_ref, wout_ref, bout_ref, o_ref, *,
                       heads, dim_head, scale):
    hdh = heads * dim_head

    x = x_ref[0]                                    # (N, Dq) f32
    wqkv = wqkv_ref[...]                            # (Dq, 3*H*dh) f32

    # Fused q/k/v projection (Conv1d k=1 / Linear, no bias) -> one MXU matmul.
    qkv = jnp.dot(x.astype(jnp.bfloat16), wqkv.astype(jnp.bfloat16),
                  preferred_element_type=jnp.float32)        # (N, 3*H*dh) f32

    q = qkv[:, :hdh] * scale                        # scale on the small q slab
    k = qkv[:, hdh:2 * hdh]
    v = qkv[:, 2 * hdh:]

    head_outs = []
    for h in range(heads):                          # short static unrolled loop
        sl = slice(h * dim_head, (h + 1) * dim_head)
        qh = q[:, sl].astype(jnp.bfloat16)          # (N, dh)
        kh = k[:, sl].astype(jnp.bfloat16)          # (N, dh)
        vh = v[:, sl].astype(jnp.bfloat16)          # (N, dh)

        # sim = q @ k^T : contract the dh axis directly (no explicit transpose).
        sim = lax.dot_general(qh, kh, (((1,), (1,)), ((), ())),
                              preferred_element_type=jnp.float32)   # (N, N) f32

        # Softmax over the key axis (f32 throughout).
        sim = sim - jnp.max(sim, axis=-1, keepdims=True)
        p = jnp.exp(sim)
        denom = jnp.sum(p, axis=-1, keepdims=True)
        attn = p * pl.reciprocal(denom, approx=True)

        oh = jnp.dot(attn.astype(jnp.bfloat16), vh,
                     preferred_element_type=jnp.float32)             # (N, dh)
        head_outs.append(oh)

    out_cat = jnp.concatenate(head_outs, axis=-1)   # (N, H*dh) lane-dense
    out = jnp.dot(out_cat.astype(jnp.bfloat16),
                  wout_ref[...].astype(jnp.bfloat16),
                  preferred_element_type=jnp.float32)                # (N, Dq)
    o_ref[0] = (out + bout_ref[...]).astype(o_ref.dtype)


def cross_attention_conv(x, wq, wk, wv, wout, bout, *, dim_head):
    """x: (B, N, Dq) f32.

    wq/wk/wv: (H, Dq, dh)  — per-head projection weights (inner channel h*dh+d)
    wout    : (H, dh, Dq), bout: (Dq,) — output 1x1-conv weight / bias.
    Returns (B, N, Dq) f32.
    """
    B, N, Dq = x.shape
    H, _, dh = wq.shape
    assert dh == dim_head
    hdh = H * dh
    scale = dim_head ** (-0.5)

    # Pack per-head weights into lane-dense slabs (inner channel = h*dh + d).
    def pack(w):  # (H, Dq, dh) -> (Dq, H*dh)
        return jnp.transpose(w, (1, 0, 2)).reshape(Dq, hdh)

    wqkv = jnp.concatenate([pack(wq), pack(wk), pack(wv)], axis=-1)  # (Dq, 3*H*dh)
    wout2d = wout.reshape(hdh, Dq)                                   # (H*dh, Dq)
    bout2d = bout.reshape(1, Dq)

    kernel = functools.partial(_cross_attn_kernel, heads=H, dim_head=dh,
                               scale=scale)

    return pl.pallas_call(
        kernel,
        out_shape=jax.ShapeDtypeStruct((B, N, Dq), jnp.float32),
        grid_spec=pltpu.PrefetchScalarGridSpec(
            num_scalar_prefetch=0,
            grid=(B,),
            in_specs=[
                pl.BlockSpec((1, N, Dq), lambda b: (b, 0, 0)),    # x
                pl.BlockSpec((Dq, 3 * hdh), lambda b: (0, 0)),    # Wqkv (resident)
                pl.BlockSpec((hdh, Dq), lambda b: (0, 0)),        # Wout (resident)
                pl.BlockSpec((1, Dq), lambda b: (0, 0)),          # bias_out
            ],
            out_specs=pl.BlockSpec((1, N, Dq), lambda b: (b, 0, 0)),
        ),
        compiler_params=pltpu.CompilerParams(
            dimension_semantics=("parallel",)),   # batch splits across v7x TCs
    )(x, wqkv, wout2d, bout2d)


def cross_attention_conv_ref(x, wq, wk, wv, wout, bout, *, dim_head):
    """Pure-JAX f32 reference mirroring the PyTorch forward (mask=None)."""
    scale = dim_head ** (-0.5)
    q = jnp.einsum('bnc,hcd->bhnd', x, wq)
    k = jnp.einsum('bnc,hcd->bhnd', x, wk)
    v = jnp.einsum('bnc,hcd->bhnd', x, wv)
    sim = jnp.einsum('bhid,bhjd->bhij', q, k) * scale
    attn = jax.nn.softmax(sim, axis=-1)
    o = jnp.einsum('bhij,bhjd->bhid', attn, v)
    out = jnp.einsum('bhnd,hdc->bnc', o, wout) + bout[None, None, :]
    return out


if __name__ == "__main__":
    # Small, deterministic problem consistent with the module:
    #   query_dim=32, heads=4, dim_head=16 (inner_dim=64), batch=2, seq=16.
    B, N, Dq = 2, 16, 32
    H, dh = 4, 16

    key = jax.random.PRNGKey(0)
    kx, kq, kk, kv, ko, kb = jax.random.split(key, 6)

    x = jax.random.normal(kx, (B, N, Dq), dtype=jnp.float32)
    wq = 0.1 * jax.random.normal(kq, (H, Dq, dh), dtype=jnp.float32)
    wk = 0.1 * jax.random.normal(kk, (H, Dq, dh), dtype=jnp.float32)
    wv = 0.1 * jax.random.normal(kv, (H, Dq, dh), dtype=jnp.float32)
    wout = 0.1 * jax.random.normal(ko, (H, dh, Dq), dtype=jnp.float32)
    bout = 0.1 * jax.random.normal(kb, (Dq,), dtype=jnp.float32)

    out = cross_attention_conv(x, wq, wk, wv, wout, bout, dim_head=dh)
    out = jax.block_until_ready(out)

    ref = cross_attention_conv_ref(x, wq, wk, wv, wout, bout, dim_head=dh)
    assert out.shape == (B, N, Dq)
    # bf16 MXU operands + approx reciprocal -> compare at bf16-level tolerance.
    assert jnp.allclose(out, ref, atol=2e-2, rtol=2e-2), \
        f"max abs err {jnp.max(jnp.abs(out - ref))}"

    print("KERNEL_OK")
</pallas_src>

<mosaic_0001>
module attributes {stable_mosaic.version = 11 : i64} {
  func.func @_cross_attn_kernel(%arg0: i32, %arg1: memref<1x16x32xf32, #tpu.memory_space<vmem>>, %arg2: memref<32x192xf32, #tpu.memory_space<vmem>>, %arg3: memref<64x32xf32, #tpu.memory_space<vmem>>, %arg4: memref<1x32xf32, #tpu.memory_space<vmem>>, %arg5: memref<1x16x32xf32, #tpu.memory_space<vmem>>) attributes {dimension_semantics = [#tpu.dimension_semantics<parallel>], iteration_bounds = array<i64: 2>, scalar_prefetch = 0 : i64, scratch_operands = 0 : i64, tpu.core_type = #tpu.core_type<tc>, window_params = [{transform_indices = @transform_0, window_bounds = array<i64: 1, 16, 32>}, {pipeline_mode = #tpu.pipeline_mode<synchronous>, transform_indices = @transform_1, window_bounds = array<i64: 32, 192>}, {pipeline_mode = #tpu.pipeline_mode<synchronous>, transform_indices = @transform_2, window_bounds = array<i64: 64, 32>}, {pipeline_mode = #tpu.pipeline_mode<synchronous>, transform_indices = @transform_3, window_bounds = array<i64: 1, 32>}, {transform_indices = @transform_4, window_bounds = array<i64: 1, 16, 32>}]} {
    %c0 = arith.constant 0 : index
    %c0_0 = arith.constant 0 : index
    %c0_1 = arith.constant 0 : index
    %0 = vector.load %arg1[%c0, %c0_0, %c0_1] : memref<1x16x32xf32, #tpu.memory_space<vmem>>, vector<1x16x32xf32>
    %1 = vector.shape_cast %0 : vector<1x16x32xf32> to vector<16x32xf32>
    %c0_2 = arith.constant 0 : index
    %c0_3 = arith.constant 0 : index
    %2 = vector.load %arg2[%c0_2, %c0_3] : memref<32x192xf32, #tpu.memory_space<vmem>>, vector<32x192xf32>
    %3 = arith.truncf %1 : vector<16x32xf32> to vector<16x32xbf16>
    %4 = arith.truncf %2 : vector<32x192xf32> to vector<32x192xbf16>
    %cst = arith.constant dense<0.000000e+00> : vector<16x192xf32>
    %5 = tpu.matmul %3, %4, %cst {dimension_numbers = #tpu.dot_dimension_numbers<[1], [0], [0], [1], [0, 0, 1, 1], [], []>} : vector<16x32xbf16>, vector<32x192xbf16>, vector<16x192xf32> -> vector<16x192xf32>
    %6 = vector.extract_strided_slice %5 {offsets = [0, 0], sizes = [16, 64], strides = [1, 1]} : vector<16x192xf32> to vector<16x64xf32>
    %cst_4 = arith.constant 2.500000e-01 : f32
    %7 = vector.broadcast %cst_4 : f32 to vector<16x64xf32>
    %8 = arith.mulf %6, %7 : vector<16x64xf32>
    %9 = vector.extract_strided_slice %5 {offsets = [0, 64], sizes = [16, 64], strides = [1, 1]} : vector<16x192xf32> to vector<16x64xf32>
    %10 = vector.extract_strided_slice %5 {offsets = [0, 128], sizes = [16, 64], strides = [1, 1]} : vector<16x192xf32> to vector<16x64xf32>
    %11 = vector.extract_strided_slice %8 {offsets = [0, 0], sizes = [16, 16], strides = [1, 1]} : vector<16x64xf32> to vector<16x16xf32>
    %12 = arith.truncf %11 : vector<16x16xf32> to vector<16x16xbf16>
    %13 = vector.extract_strided_slice %9 {offsets = [0, 0], sizes = [16, 16], strides = [1, 1]} : vector<16x64xf32> to vector<16x16xf32>
    %14 = arith.truncf %13 : vector<16x16xf32> to vector<16x16xbf16>
    %15 = vector.extract_strided_slice %10 {offsets = [0, 0], sizes = [16, 16], strides = [1, 1]} : vector<16x64xf32> to vector<16x16xf32>
    %16 = arith.truncf %15 : vector<16x16xf32> to vector<16x16xbf16>
    %cst_5 = arith.constant dense<0.000000e+00> : vector<16x16xf32>
    %17 = tpu.matmul %12, %14, %cst_5 {dimension_numbers = #tpu.dot_dimension_numbers<[1], [1], [0], [0], [0, 0, 1, 0], [], []>} : vector<16x16xbf16>, vector<16x16xbf16>, vector<16x16xf32> -> vector<16x16xf32>
    %cst_6 = arith.constant dense<0xFF800000> : vector<16xf32>
    %18 = vector.multi_reduction <maximumf>, %17, %cst_6 [1] : vector<16x16xf32> to vector<16xf32>
    %19 = vector.shape_cast %18 : vector<16xf32> to vector<16x1xf32>
    %20 = vector.broadcast %19 : vector<16x1xf32> to vector<16x16xf32>
    %21 = arith.subf %17, %20 : vector<16x16xf32>
    %22 = math.exp %21 : vector<16x16xf32>
    %cst_7 = arith.constant dense<0.000000e+00> : vector<16xf32>
    %23 = vector.multi_reduction <add>, %22, %cst_7 [1] : vector<16x16xf32> to vector<16xf32>
    %24 = vector.shape_cast %23 : vector<16xf32> to vector<16x1xf32>
    %25 = tpu.reciprocal %24 {approx = true} : vector<16x1xf32> -> vector<16x1xf32>
    %26 = vector.broadcast %25 : vector<16x1xf32> to vector<16x16xf32>
    %27 = arith.mulf %22, %26 : vector<16x16xf32>
    %28 = arith.truncf %27 : vector<16x16xf32> to vector<16x16xbf16>
    %cst_8 = arith.constant dense<0.000000e+00> : vector<16x16xf32>
    %29 = tpu.matmul %28, %16, %cst_8 {dimension_numbers = #tpu.dot_dimension_numbers<[1], [0], [0], [1], [0, 0, 1, 1], [], []>} : vector<16x16xbf16>, vector<16x16xbf16>, vector<16x16xf32> -> vector<16x16xf32>
    %30 = vector.extract_strided_slice %8 {offsets = [0, 16], sizes = [16, 16], strides = [1, 1]} : vector<16x64xf32> to vector<16x16xf32>
    %31 = arith.truncf %30 : vector<16x16xf32> to vector<16x16xbf16>
    %32 = vector.extract_strided_slice %9 {offsets = [0, 16], sizes = [16, 16], strides = [1, 1]} : vector<16x64xf32> to vector<16x16xf32>
    %33 = arith.truncf %32 : vector<16x16xf32> to vector<16x16xbf16>
    %34 = vector.extract_strided_slice %10 {offsets = [0, 16], sizes = [16, 16], strides = [1, 1]} : vector<16x64xf32> to vector<16x16xf32>
    %35 = arith.truncf %34 : vector<16x16xf32> to vector<16x16xbf16>
    %cst_9 = arith.constant dense<0.000000e+00> : vector<16x16xf32>
    %36 = tpu.matmul %31, %33, %cst_9 {dimension_numbers = #tpu.dot_dimension_numbers<[1], [1], [0], [0], [0, 0, 1, 0], [], []>} : vector<16x16xbf16>, vector<16x16xbf16>, vector<16x16xf32> -> vector<16x16xf32>
    %cst_10 = arith.constant dense<0xFF800000> : vector<16xf32>
    %37 = vector.multi_reduction <maximumf>, %36, %cst_10 [1] : vector<16x16xf32> to vector<16xf32>
    %38 = vector.shape_cast %37 : vector<16xf32> to vector<16x1xf32>
    %39 = vector.broadcast %38 : vector<16x1xf32> to vector<16x16xf32>
    %40 = arith.subf %36, %39 : vector<16x16xf32>
    %41 = math.exp %40 : vector<16x16xf32>
    %cst_11 = arith.constant dense<0.000000e+00> : vector<16xf32>
    %42 = vector.multi_reduction <add>, %41, %cst_11 [1] : vector<16x16xf32> to vector<16xf32>
    %43 = vector.shape_cast %42 : vector<16xf32> to vector<16x1xf32>
    %44 = tpu.reciprocal %43 {approx = true} : vector<16x1xf32> -> vector<16x1xf32>
    %45 = vector.broadcast %44 : vector<16x1xf32> to vector<16x16xf32>
    %46 = arith.mulf %41, %45 : vector<16x16xf32>
    %47 = arith.truncf %46 : vector<16x16xf32> to vector<16x16xbf16>
    %cst_12 = arith.constant dense<0.000000e+00> : vector<16x16xf32>
    %48 = tpu.matmul %47, %35, %cst_12 {dimension_numbers = #tpu.dot_dimension_numbers<[1], [0], [0], [1], [0, 0, 1, 1], [], []>} : vector<16x16xbf16>, vector<16x16xbf16>, vector<16x16xf32> -> vector<16x16xf32>
    %49 = vector.extract_strided_slice %8 {offsets = [0, 32], sizes = [16, 16], strides = [1, 1]} : vector<16x64xf32> to vector<16x16xf32>
    %50 = arith.truncf %49 : vector<16x16xf32> to vector<16x16xbf16>
    %51 = vector.extract_strided_slice %9 {offsets = [0, 32], sizes = [16, 16], strides = [1, 1]} : vector<16x64xf32> to vector<16x16xf32>
    %52 = arith.truncf %51 : vector<16x16xf32> to vector<16x16xbf16>
    %53 = vector.extract_strided_slice %10 {offsets = [0, 32], sizes = [16, 16], strides = [1, 1]} : vector<16x64xf32> to vector<16x16xf32>
    %54 = arith.truncf %53 : vector<16x16xf32> to vector<16x16xbf16>
    %cst_13 = arith.constant dense<0.000000e+00> : vector<16x16xf32>
    %55 = tpu.matmul %50, %52, %cst_13 {dimension_numbers = #tpu.dot_dimension_numbers<[1], [1], [0], [0], [0, 0, 1, 0], [], []>} : vector<16x16xbf16>, vector<16x16xbf16>, vector<16x16xf32> -> vector<16x16xf32>
    %cst_14 = arith.constant dense<0xFF800000> : vector<16xf32>
    %56 = vector.multi_reduction <maximumf>, %55, %cst_14 [1] : vector<16x16xf32> to vector<16xf32>
    %57 = vector.shape_cast %56 : vector<16xf32> to vector<16x1xf32>
    %58 = vector.broadcast %57 : vector<16x1xf32> to vector<16x16xf32>
    %59 = arith.subf %55, %58 : vector<16x16xf32>
    %60 = math.exp %59 : vector<16x16xf32>
    %cst_15 = arith.constant dense<0.000000e+00> : vector<16xf32>
    %61 = vector.multi_reduction <add>, %60, %cst_15 [1] : vector<16x16xf32> to vector<16xf32>
    %62 = vector.shape_cast %61 : vector<16xf32> to vector<16x1xf32>
    %63 = tpu.reciprocal %62 {approx = true} : vector<16x1xf32> -> vector<16x1xf32>
    %64 = vector.broadcast %63 : vector<16x1xf32> to vector<16x16xf32>
    %65 = arith.mulf %60, %64 : vector<16x16xf32>
    %66 = arith.truncf %65 : vector<16x16xf32> to vector<16x16xbf16>
    %cst_16 = arith.constant dense<0.000000e+00> : vector<16x16xf32>
    %67 = tpu.matmul %66, %54, %cst_16 {dimension_numbers = #tpu.dot_dimension_numbers<[1], [0], [0], [1], [0, 0, 1, 1], [], []>} : vector<16x16xbf16>, vector<16x16xbf16>, vector<16x16xf32> -> vector<16x16xf32>
    %68 = vector.extract_strided_slice %8 {offsets = [0, 48], sizes = [16, 16], strides = [1, 1]} : vector<16x64xf32> to vector<16x16xf32>
    %69 = arith.truncf %68 : vector<16x16xf32> to vector<16x16xbf16>
    %70 = vector.extract_strided_slice %9 {offsets = [0, 48], sizes = [16, 16], strides = [1, 1]} : vector<16x64xf32> to vector<16x16xf32>
    %71 = arith.truncf %70 : vector<16x16xf32> to vector<16x16xbf16>
    %72 = vector.extract_strided_slice %10 {offsets = [0, 48], sizes = [16, 16], strides = [1, 1]} : vector<16x64xf32> to vector<16x16xf32>
    %73 = arith.truncf %72 : vector<16x16xf32> to vector<16x16xbf16>
    %cst_17 = arith.constant dense<0.000000e+00> : vector<16x16xf32>
    %74 = tpu.matmul %69, %71, %cst_17 {dimension_numbers = #tpu.dot_dimension_numbers<[1], [1], [0], [0], [0, 0, 1, 0], [], []>} : vector<16x16xbf16>, vector<16x16xbf16>, vector<16x16xf32> -> vector<16x16xf32>
    %cst_18 = arith.constant dense<0xFF800000> : vector<16xf32>
    %75 = vector.multi_reduction <maximumf>, %74, %cst_18 [1] : vector<16x16xf32> to vector<16xf32>
    %76 = vector.shape_cast %75 : vector<16xf32> to vector<16x1xf32>
    %77 = vector.broadcast %76 : vector<16x1xf32> to vector<16x16xf32>
    %78 = arith.subf %74, %77 : vector<16x16xf32>
    %79 = math.exp %78 : vector<16x16xf32>
    %cst_19 = arith.constant dense<0.000000e+00> : vector<16xf32>
    %80 = vector.multi_reduction <add>, %79, %cst_19 [1] : vector<16x16xf32> to vector<16xf32>
    %81 = vector.shape_cast %80 : vector<16xf32> to vector<16x1xf32>
    %82 = tpu.reciprocal %81 {approx = true} : vector<16x1xf32> -> vector<16x1xf32>
    %83 = vector.broadcast %82 : vector<16x1xf32> to vector<16x16xf32>
    %84 = arith.mulf %79, %83 : vector<16x16xf32>
    %85 = arith.truncf %84 : vector<16x16xf32> to vector<16x16xbf16>
    %cst_20 = arith.constant dense<0.000000e+00> : vector<16x16xf32>
    %86 = tpu.matmul %85, %73, %cst_20 {dimension_numbers = #tpu.dot_dimension_numbers<[1], [0], [0], [1], [0, 0, 1, 1], [], []>} : vector<16x16xbf16>, vector<16x16xbf16>, vector<16x16xf32> -> vector<16x16xf32>
    %87 = tpu.concatenate %29, %48, %67, %86 in 1 : vector<16x16xf32>, vector<16x16xf32>, vector<16x16xf32>, vector<16x16xf32> -> vector<16x64xf32>
    %88 = arith.truncf %87 : vector<16x64xf32> to vector<16x64xbf16>
    %c0_21 = arith.constant 0 : index
    %c0_22 = arith.constant 0 : index
    %89 = vector.load %arg3[%c0_21, %c0_22] : memref<64x32xf32, #tpu.memory_space<vmem>>, vector<64x32xf32>
    %90 = arith.truncf %89 : vector<64x32xf32> to vector<64x32xbf16>
    %cst_23 = arith.constant dense<0.000000e+00> : vector<16x32xf32>
    %91 = tpu.matmul %88, %90, %cst_23 {dimension_numbers = #tpu.dot_dimension_numbers<[1], [0], [0], [1], [0, 0, 1, 1], [], []>} : vector<16x64xbf16>, vector<64x32xbf16>, vector<16x32xf32> -> vector<16x32xf32>
    %c0_24 = arith.constant 0 : index
    %c0_25 = arith.constant 0 : index
    %92 = vector.load %arg4[%c0_24, %c0_25] : memref<1x32xf32, #tpu.memory_space<vmem>>, vector<1x32xf32>
    %93 = vector.broadcast %92 : vector<1x32xf32> to vector<16x32xf32>
    %94 = arith.addf %91, %93 : vector<16x32xf32>
    %c0_26 = arith.constant 0 : index
    %c0_27 = arith.constant 0 : index
    %c0_28 = arith.constant 0 : index
    %95 = vector.load %arg5[%c0_26, %c0_27, %c0_28] : memref<1x16x32xf32, #tpu.memory_space<vmem>>, vector<1x16x32xf32>
    %96 = vector.shape_cast %95 : vector<1x16x32xf32> to vector<16x32xf32>
    %97 = vector.shape_cast %94 : vector<16x32xf32> to vector<1x16x32xf32>
    tpu.vector_store %arg5[%c0_26, %c0_27, %c0_28], %97 {strides = array<i32>} : memref<1x16x32xf32, #tpu.memory_space<vmem>>, vector<1x16x32xf32>,
    return
  }
  func.func @transform_0(%arg0: i32) -> (i32, i32, i32) {
    %c0_i32 = arith.constant 0 : i32
    %c0_i32_0 = arith.constant 0 : i32
    %c0_i32_1 = arith.constant 0 : i32
    return %arg0, %c0_i32, %c0_i32_0 : i32, i32, i32
  }
  func.func @transform_1(%arg0: i32) -> (i32, i32) {
    %c0_i32 = arith.constant 0 : i32
    %c0_i32_0 = arith.constant 0 : i32
    %c0_i32_1 = arith.constant 0 : i32
    return %c0_i32, %c0_i32_0 : i32, i32
  }
  func.func @transform_2(%arg0: i32) -> (i32, i32) {
    %c0_i32 = arith.constant 0 : i32
    %c0_i32_0 = arith.constant 0 : i32
    %c0_i32_1 = arith.constant 0 : i32
    return %c0_i32, %c0_i32_0 : i32, i32
  }
  func.func @transform_3(%arg0: i32) -> (i32, i32) {
    %c0_i32 = arith.constant 0 : i32
    %c0_i32_0 = arith.constant 0 : i32
    %c0_i32_1 = arith.constant 0 : i32
    return %c0_i32, %c0_i32_0 : i32, i32
  }
  func.func @transform_4(%arg0: i32) -> (i32, i32, i32) {
    %c0_i32 = arith.constant 0 : i32
    %c0_i32_0 = arith.constant 0 : i32
    %c0_i32_1 = arith.constant 0 : i32
    return %arg0, %c0_i32, %c0_i32_0 : i32, i32, i32
  }
}

</mosaic_0001>

<bundles_post_ra>
// kernel: tpu_custom_call.1
= control target key start
LH: loop header
LB: loop body
LE: loop exit
PB: predicated region body
PF: predicated region fallthrough
CT: control target
= control target key end

     0   :  { %9 = vsyncpa [#allocation3], 0  ;;  %s1461_s0 = inlined_call_operand.vmem [shape: f32[2,16,32], index: 0, kind: input, shape index: {}]   ;;  %s1462_s1 = inlined_call_operand.vmem [shape: f32[32,192], index: 1, kind: input, shape index: {}]   ;;  %s1463_s2 = inlined_call_operand.vmem [shape: f32[64,32], index: 2, kind: input, shape index: {}]   ;;  %s1464_s3 = inlined_call_operand.vmem [shape: f32[1,32], index: 3, kind: input, shape index: {}]   ;;  %s1465_s4 = inlined_call_operand.hbm [shape: f32[2,16,32], index: 4, kind: output, shape index: {}]  }
   0x1   :  { %11 = vsyncpa [#allocation3 + $0x1], 0  ;;  %s1225_s15 = smov 0   ;;  %s1227_s16 = smov 0  }
   0x2   :  { %s1229_s17 = smov 0   ;;  %s1231_s18 = smov 0  }
   0x3 LB: > { %s1246_s19 = sadd.s32 4294967295, %s1185_s18   ;;  %s921_s20 = sadd.s32 4294967294, %s1185_s18   ;;  %s1185_s18 = sphi %s1231_s18, %s1471_s18   ;;  %s1181_s17 = sphi %s1229_s17, %s1470_s17   ;;  %s1177_s16 = sphi %s1227_s16, %s1469_s16   ;;  %s1173_s15 = sphi %s1225_s15, %s1468_s15  }
   0x4   : > { %s1250_s21 = sadd.s32 1, %s1185_s18   ;;  %s113_s22 = sadd.s32 1, %s1181_s17 }
   0x5   : > { %s110_s23 = ssub.s32 %s1185_s18, %s1250_s21  ;;  %p123_p0 = scmp.ne.s32.totalorder %s1181_s17, %s1177_s16 }
   0x6   : > { %p111_p1 = scmp.eq.s32.totalorder %s110_s23, 0  ;;  %p124_p2 = scmp.eq.s32.totalorder %s1246_s19, 1 }
   0x7   : > { %p129_p3 = scmp.ne.s32.totalorder %s1177_s16, %s1173_s15  ;;  %p130_p4 = scmp.eq.s32.totalorder %s921_s20, 1 }
   0x8   : > { %s1261_s24 = scalar_select %p111_p1, %s1181_s17, %s113_s22  }
   0x9   : > { %p1263_p5 = por %p124_p2, %p123_p0  ;;  %p1267_p6 = por %p130_p4, %p129_p3 }
   0xa   : > { %p924_p7 = scmp.ge.s32.totalorder %s1185_s18, 1  ;;  %p165_p8 = scmp.lt.s32.totalorder %s1185_s18, 3 }
   0xc   : > { %p166_p9 = pnand %p924_p7, %p165_p8 }
   0xd   : > { %p191_p10 = scmp.lt.s32.totalorder (!%p166_p9), %s1246_s19, 1  ;;  %s1190_s5 = smov (!%p166_p9), 64  }
   0xe   : > { %169 = sbr.rel (%p166_p9) target bundleno = 1464 (0x5b8), region = 36  ;;  %s1191_s6 = smov (!%p166_p9), 112  }
   0xf   : > { %s1192_s7 = smov (!%p166_p9), 48   ;;  %s1193_s8 = smov (!%p166_p9), 32  }
  0x10   : > { %s1194_s9 = smov (!%p166_p9), 96   ;;  %s1195_s10 = smov (!%p166_p9), 16  }
  0x11   : > { %s1196_s11 = smov (!%p166_p9), 80  }
  0x13   : > { %v204_v0 = vld [vmem:[%s1462_s1 + $0x28] sm:$0xff]  ;;  %v206_v1 = vld [vmem:[%s1462_s1 + $0x38] sm:$0xff]  ;;  %v203_v2 = vld [vmem:[%s1462_s1 + $0x20] sm:$0xff]  ;;  %v1187_v7 = vmov 0   ;;  %s192_s23 = scalar_select %p191_p10, %s1246_s19, 1  ;;  %vm212_vm0 = vcmask 261120  }
  0x14   : > { %v211_v3 = vpack.c.bf16 %v206_v1, %v204_v0  ;;  %v205_v4 = vld [vmem:[%s1462_s1 + $0x30] sm:$0xff]  ;;  %v200_v5 = vld [vmem:[%s1462_s1 + $0x8] sm:$0xff]  ;;  %v202_v6 = vld [vmem:[%s1462_s1 + $0x18] sm:$0xff]  ;;  %248 = vmatprep.mubr.bf16.mxu0 %v1187_v7  ;;  %v1188_v16 = vmov 0.0   ;;  %vm1189_vm1 = vmmov 0   ;;  %vm267_vm2 = vcmask 130048  }
  0x15   : > { %v210_v8 = vpack.c.bf16 %v205_v4, %v203_v2  ;;  %v209_v9 = vpack.c.bf16 %v202_v6, %v200_v5  ;;  %v199_v10 = vld [vmem:[%s1462_s1] sm:$0xff]  ;;  %v201_v11 = vld [vmem:[%s1462_s1 + $0x10] sm:$0xff]  ;;  %s944_s27 = sshll.u32 %s192_s23, 4  ;;  %967 = vmatprep.subr.bf16.mxu1 %v1188_v16  ;;  %969 = vmatprep.mubr.msk.bf16.mxu1 %vm1189_vm1, %v1188_v16  ;;  %vm775_vm3 = vcmask 392192   ;;  %vm798_vm4 = vcmask 523264   ;;  %s945_s23 = sshll.u32 %s1246_s19, 8 }
  0x16   : > { %228 = vmatprep.subr.bf16.mxu0 %v211_v3  ;;  %v208_v12 = vpack.c.bf16 %v201_v11, %v199_v10  ;;  %s195_s30 = scalar_lea.vmem %s1461_s0, %s944_s27  ;;  %s1418_s29 = scalar_lea.hbm %s1465_s4, %s945_s23 }
  0x17   : > { %229 = vmatpush1.bf16.msra.mxu0 %v210_v8  ;;  %v197_v13 = vld [vmem:[%s195_s30] sm:$0xff]  ;;  %v198_v14 = vld [vmem:[%s195_s30 + $0x8] sm:$0xff] }
  0x18   : > { %230 = vmatprep.subr.bf16.mxu0 %v209_v9  ;;  %v207_v15 = vpack.c.bf16 %v198_v14, %v197_v13 }
  0x1b   : > { %231 = vmatpush1.bf16.msra.mxu0 %v208_v12 }
  0x1c   : > { %973 = vmatprep.subr.bf16.mxu0 %v1188_v16 }
  0x1e   : > { %928 = vmatmul.mubr.msk.bf16.vlgmr.msra.gmra.mxu0 %vm212_vm0, %v207_v15 }
  0x1f   : > { %975 = vmatprep.mubr.msk.bf16.mxu0 %vm1189_vm1, %v1188_v16 }
  0xde   : > { %v250_v17 = vpop.f32.mrf.mxu0 }
  0xdf   : > { %v259_v20 = vmul.f32 0.25, %v250_v17 }
  0xe0   : > { %v252_v18 = vpop.f32.mrf.mxu0 }
  0xe2   : > { %v254_v19 = vpop.f32.mrf.mxu0 }
  0xe3   : > { %v260_v21 = vmul.f32 0.25, %v254_v19  ;;  %v262_v22 = vpack.c.bf16 %v254_v19, %v250_v17 }
  0xe4   : > { %v256_v23 = vpop.f32.mrf.mxu0 }
  0xe5   : > { %v261_v24 = vpack.c.bf16 %v260_v21, %v259_v20  ;;  %v1309_v25 = vpack.c.bf16 %v256_v23, %v252_v18  ;;  %265 = vrot.lane.b32.xlu0 %v262_v22, %s1190_s5  ;;  %s1197_s5 = smov [#allocation2]  }
  0xe7   : > { %383 = vrot.lane.b32.xlu1 %v261_v24, %s1191_s6  ;;  %974 = vmatpush3.bf16.msra.mxu0 %v1309_v25 }
  0xe8   : > { %985 = vmatprep.subr.bf16.mxu0 %v1188_v16 }
  0xe9   : > { %385 = vrot.lane.b32.xlu0 %v262_v22, %s1192_s7 }
  0xeb   : > { %507 = vrot.lane.b32.xlu1 %v262_v22, %s1193_s8 }
  0xed   : > { %505 = vrot.lane.b32.xlu0 %v261_v24, %s1194_s9 }
  0xef   : > { %628 = vrot.lane.b32.xlu1 %v262_v22, %s1195_s10 }
  0xf1   : > { %626 = vrot.lane.b32.xlu0 %v261_v24, %s1196_s11 }
 0x157   : > { %v266_v26 = vpop.permute.xlu0 %265 }
 0x158   : > { %v272_v27 = vsel %vm267_vm2, %v266_v26, 0 }
 0x159   : > { %968 = vmatpush3.bf16.xpose.msra.mxu1 %v272_v27  ;;  %v384_v29 = vpop.permute.xlu1 %383 }
 0x15a   : > { %979 = vmatprep.subr.bf16.mxu1 %v1188_v16 }
 0x15b   : > { %v386_v28 = vpop.permute.xlu0 %385 }
 0x15c   : > { %v391_v30 = vsel %vm267_vm2, %v386_v28, 0 }
 0x15d   : > { %v508_v31 = vpop.permute.xlu1 %507 }
 0x15e   : > { %v513_v32 = vsel %vm267_vm2, %v508_v31, 0 }
 0x15f   : > { %v506_v34 = vpop.permute.xlu0 %505 }
 0x160   : > { %970 = vmatmul.mubr.msk.bf16.vlgmr.msra.gmra.mxu1 %vm267_vm2, %v261_v24 }
 0x161   : > { %980 = vmatpush3.bf16.xpose.msra.mxu1 %v391_v30  ;;  %981 = vmatprep.mubr.msk.bf16.mxu1 %vm1189_vm1, %v1188_v16  ;;  %v629_v33 = vpop.permute.xlu1 %628 }
 0x162   : > { %991 = vmatprep.subr.bf16.mxu1 %v1188_v16  ;;  %v634_v35 = vsel %vm267_vm2, %v629_v33, 0 }
 0x163   : > { %v627_v36 = vpop.permute.xlu0 %626 }
 0x168   : > { %982 = vmatmul.mubr.msk.bf16.vlgmr.msra.gmra.mxu1 %vm267_vm2, %v384_v29 }
 0x169   : > { %992 = vmatpush3.bf16.xpose.msra.mxu1 %v513_v32  ;;  %993 = vmatprep.mubr.msk.bf16.mxu1 %vm1189_vm1, %v1188_v16 }
 0x16a   : > { %1003 = vmatprep.subr.bf16.mxu1 %v1188_v16 }
 0x170   : > { %994 = vmatmul.mubr.msk.bf16.vlgmr.msra.gmra.mxu1 %vm267_vm2, %v506_v34 }
 0x171   : > { %1004 = vmatpush3.bf16.xpose.msra.mxu1 %v634_v35  ;;  %1005 = vmatprep.mubr.msk.bf16.mxu1 %vm1189_vm1, %v1188_v16 }
 0x172   : > { %1015 = vmatprep.subr.bf16.mxu1 %v1188_v16 }
 0x178   : > { %1006 = vmatmul.mubr.msk.bf16.vlgmr.msra.gmra.mxu1 %vm267_vm2, %v627_v36 }
 0x179   : > { %1023 = vmatprep.mubr.msk.bf16.mxu1 %vm1189_vm1, %v1188_v16 }
 0x220   : > { %v308_v37 = vpop.f32.mrf.mxu1 }
 0x221   : > { %v315_v38 = vsel %vm267_vm2, %v308_v37, -inf }
 0x222   : > { %316 = vmax.xlane.f32.xlu1 %v315_v38  ;;  %v971_v39 = vpop.f32.mrf.mxu1 }
 0x224   : > { %v311_v40 = vpop.f32.mrf.mxu1 }
 0x225   : > { %v318_v41 = vsel %vm267_vm2, %v311_v40, -inf }
 0x226   : > { %319 = vmax.xlane.f32.xlu0 %v318_v41  ;;  %v972_v42 = vpop.f32.mrf.mxu1 }
 0x228   : > { %v427_v43 = vpop.f32.mrf.mxu1 }
 0x229   : > { %v434_v44 = vsel %vm267_vm2, %v427_v43, -inf }
 0x22a   : > { %435 = vmax.xlane.f32.xlu0 %v434_v44  ;;  %v983_v45 = vpop.f32.mrf.mxu1 }
 0x22c   : > { %v430_v46 = vpop.f32.mrf.mxu1 }
 0x22d   : > { %v437_v47 = vsel %vm267_vm2, %v430_v46, -inf }
 0x22e   : > { %438 = vmax.xlane.f32.xlu1 %v437_v47  ;;  %v984_v48 = vpop.f32.mrf.mxu1 }
 0x230   : > { %v549_v49 = vpop.f32.mrf.mxu1 }
 0x231   : > { %v556_v50 = vsel %vm267_vm2, %v549_v49, -inf }
 0x232   : > { %557 = vmax.xlane.f32.xlu0 %v556_v50  ;;  %v995_v51 = vpop.f32.mrf.mxu1 }
 0x234   : > { %v552_v52 = vpop.f32.mrf.mxu1 }
 0x235   : > { %v559_v53 = vsel %vm267_vm2, %v552_v52, -inf }
 0x236   : > { %560 = vmax.xlane.f32.xlu1 %v559_v53  ;;  %v996_v54 = vpop.f32.mrf.mxu1 }
 0x238   : > { %v670_v55 = vpop.f32.mrf.mxu1 }
 0x239   : > { %v677_v56 = vsel %vm267_vm2, %v670_v55, -inf }
 0x23a   : > { %678 = vmax.xlane.f32.xlu0 %v677_v56  ;;  %v1007_v57 = vpop.f32.mrf.mxu1 }
 0x23c   : > { %v673_v58 = vpop.f32.mrf.mxu1 }
 0x23d   : > { %v680_v59 = vsel %vm267_vm2, %v673_v58, -inf }
 0x23e   : > { %681 = vmax.xlane.f32.xlu1 %v680_v59  ;;  %v1008_v60 = vpop.f32.mrf.mxu1 }
 0x2ab   : > { %v317_v61 = vpop.xlane.xlu1 %316 }
 0x2ac   : > { %v321_v62 = vsub.f32 %v308_v37, %v317_v61 }
 0x2ae   : > { %v323_v63 = vmul.f32 1.442695, %v321_v62 }
 0x2af   : > { %v320_v0 = vpop.xlane.xlu0 %319 }
 0x2b0   : > { %1093 = vpow2.f32 %v323_v63  ;;  %v322_v1 = vsub.f32 %v311_v40, %v320_v0 }
 0x2b2   : > { %v325_v2 = vmul.f32 1.442695, %v322_v1 }
 0x2b3   : > { %v436_v3 = vpop.xlane.xlu0 %435 }
 0x2b4   : > { %1095 = vpow2.f32 %v325_v2  ;;  %v440_v4 = vsub.f32 %v427_v43, %v436_v3 }
 0x2b6   : > { %v442_v5 = vmul.f32 1.442695, %v440_v4 }
 0x2b7   : > { %v439_v6 = vpop.xlane.xlu1 %438 }
 0x2b8   : > { %1097 = vpow2.f32 %v442_v5  ;;  %v441_v7 = vsub.f32 %v430_v46, %v439_v6 }
 0x2ba   : > { %v444_v8 = vmul.f32 1.442695, %v441_v7 }
 0x2bb   : > { %v558_v9 = vpop.xlane.xlu0 %557 }
 0x2bc   : > { %1099 = vpow2.f32 %v444_v8  ;;  %v562_v10 = vsub.f32 %v549_v49, %v558_v9 }
 0x2bd   : > { %v1094_v11 = vpop.eup %1093 }
 0x2be   : > { %v564_v12 = vmul.f32 1.442695, %v562_v10  ;;  %v327_v13 = vsel %vm267_vm2, %v1094_v11, 0.0 }
 0x2bf   : > { %v561_v14 = vpop.xlane.xlu1 %560  ;;  %328 = vadd.xlane.f32.xlu0 %v327_v13  ;;  %v786_v13 = vld [vmem:[%s1463_s2 + $0x38] sm:$0xff] }
 0x2c0   : > { %1101 = vpow2.f32 %v564_v12  ;;  %v563_v15 = vsub.f32 %v552_v52, %v561_v14  ;;  %v785_v12 = vld [vmem:[%s1463_s2 + $0x30] sm:$0xff]  ;;  %v783_v14 = vld [vmem:[%s1463_s2 + $0x20] sm:$0xff] }
 0x2c1   : > { %v1096_v17 = vpop.eup %1095 }
 0x2c2   : > { %v566_v18 = vmul.f32 1.442695, %v563_v15  ;;  %v330_v19 = vsel %vm267_vm2, %v1096_v17, 0.0 }
 0x2c3   : > { %v679_v20 = vpop.xlane.xlu0 %678  ;;  %331 = vadd.xlane.f32.xlu1 %v330_v19 }
 0x2c4   : > { %1103 = vpow2.f32 %v566_v18  ;;  %v683_v21 = vsub.f32 %v670_v55, %v679_v20  ;;  %v784_v18 = vld [vmem:[%s1463_s2 + $0x28] sm:$0xff] }
 0x2c5   : > { %v1098_v22 = vpop.eup %1097  ;;  %v789_v20 = vpack.c.bf16 %v784_v18, %v783_v14 }
 0x2c6   : > { %v685_v23 = vmul.f32 1.442695, %v683_v21  ;;  %v446_v24 = vsel %vm267_vm2, %v1098_v22, 0.0 }
 0x2c7   : > { %447 = vadd.xlane.f32.xlu0 %v446_v24  ;;  %v682_v34 = vpop.xlane.xlu1 %681 }
 0x2c8   : > { %1105 = vpow2.f32 %v685_v23  ;;  %v684_v35 = vsub.f32 %v673_v58, %v682_v34  ;;  %v782_v23 = vld [vmem:[%s1463_s2 + $0x18] sm:$0xff] }
 0x2c9   : > { %v1100_v26 = vpop.eup %1099 }
 0x2ca   : > { %v449_v27 = vsel %vm267_vm2, %v1100_v26, 0.0  ;;  %v687_v36 = vmul.f32 1.442695, %v684_v35 }
 0x2cb   : > { %450 = vadd.xlane.f32.xlu1 %v449_v27 }
 0x2cc   : > { %1107 = vpow2.f32 %v687_v36 }
 0x2cd   : > { %v1102_v28 = vpop.eup %1101 }
 0x2ce   : > { %v568_v29 = vsel %vm267_vm2, %v1102_v28, 0.0 }
 0x2cf   : > { %569 = vadd.xlane.f32.xlu0 %v568_v29 }
 0x2d1   : > { %v1104_v30 = vpop.eup %1103 }
 0x2d2   : > { %v571_v31 = vsel %vm267_vm2, %v1104_v30, 0.0 }
 0x2d3   : > { %572 = vadd.xlane.f32.xlu1 %v571_v31  ;;  %v780_v31 = vld [vmem:[%s1463_s2 + $0x8] sm:$0xff] }
 0x2d5   : > { %v1106_v32 = vpop.eup %1105 }
 0x2d6   : > { %v689_v33 = vsel %vm267_vm2, %v1106_v32, 0.0 }
 0x2d7   : > { %690 = vadd.xlane.f32.xlu0 %v689_v33 }
 0x2d9   : > { %v1108_v37 = vpop.eup %1107 }
 0x2da   : > { %v692_v38 = vsel %vm267_vm2, %v1108_v37, 0.0 }
 0x2e4   : > { %579 = vrot.lane.b32.xlu1 %v1309_v25, %s1194_s9 }
 0x2ed   : > { %458 = vrot.lane.b32.xlu0 %v1309_v25, %s1191_s6  ;;  %s1129_s6 = sshll.u32 %s1197_s5, 4  ;;  %s1130_s6 = int_to_ptr.vmem [resolvable:$false] %s1129_s6 }
 0x2ee   : > { %s1131_s9 = scalar_lea.vmem %s1130_s6, 512 }
 0x308   : > { %693 = vadd.xlane.f32.xlu1 %v692_v38 }
 0x319   : > { %700 = vrot.lane.b32.xlu1 %v1309_v25, %s1196_s11 }
 0x348   : > { %v329_v39 = vpop.xlane.xlu0 %328 }
 0x349   : > { %1109 = vrcp.f32 %v329_v39 }
 0x34c   : > { %v332_v40 = vpop.xlane.xlu1 %331 }
 0x34d   : > { %1111 = vrcp.f32 %v332_v40 }
 0x350   : > { %v448_v41 = vpop.xlane.xlu0 %447 }
 0x351   : > { %1113 = vrcp.f32 %v448_v41 }
 0x354   : > { %v451_v42 = vpop.xlane.xlu1 %450 }
 0x355   : > { %1115 = vrcp.f32 %v451_v42 }
 0x356   : > { %v1110_v43 = vpop.eup %1109 }
 0x357   : > { %v335_v46 = vmul.f32 %v1110_v43, %v1094_v11 }
 0x358   : > { %v570_v44 = vpop.xlane.xlu0 %569 }
 0x359   : > { %1117 = vrcp.f32 %v570_v44 }
 0x35a   : > { %v1112_v45 = vpop.eup %1111 }
 0x35b   : > { %v336_v47 = vmul.f32 %v1112_v45, %v1096_v17  ;;  %v790_v17 = vpack.c.bf16 %v786_v13, %v785_v12 }
 0x35c   : > { %v573_v48 = vpop.xlane.xlu1 %572 }
 0x35d   : > { %1119 = vrcp.f32 %v573_v48  ;;  %v337_v49 = vpack.c.bf16 %v336_v47, %v335_v46  ;;  %1016 = vmatpush3.bf16.msra.mxu1 %v790_v17 }
 0x35e   : > { %v1114_v25 = vpop.eup %1113  ;;  %1017 = vmatprep.subr.bf16.mxu1 %v1188_v16 }
 0x35f   : > { %976 = vmatmul.mubr.msk.bf16.vlgmr.msra.gmra.mxu0 %vm267_vm2, %v337_v49  ;;  %v454_v52 = vmul.f32 %v1114_v25, %v1098_v22  ;;  %v781_v22 = vld [vmem:[%s1463_s2 + $0x10] sm:$0xff] }
 0x360   : > { %v691_v50 = vpop.xlane.xlu0 %690  ;;  %987 = vmatprep.mubr.msk.bf16.mxu0 %vm1189_vm1, %v1188_v16  ;;  %v580_v57 = vpop.permute.xlu1 %579 }
 0x361   : > { %1121 = vrcp.f32 %v691_v50  ;;  %1018 = vmatpush3.bf16.msra.mxu1 %v789_v20 }
 0x362   : > { %v1116_v51 = vpop.eup %1115  ;;  %1019 = vmatprep.subr.bf16.mxu1 %v1188_v16 }
 0x363   : > { %v455_v53 = vmul.f32 %v1116_v51, %v1100_v26  ;;  %v788_v26 = vpack.c.bf16 %v782_v23, %v781_v22 }
 0x364   : > { %v459_v54 = vpop.permute.xlu0 %458 }
 0x365   : > { %986 = vmatpush3.bf16.msra.mxu0 %v459_v54  ;;  %v456_v55 = vpack.c.bf16 %v455_v53, %v454_v52  ;;  %1020 = vmatpush3.bf16.msra.mxu1 %v788_v26  ;;  %v937_v52 = vld [vmem:[%s1464_s3] ss:$0 sm:$0xff] }
 0x366   : > { %997 = vmatprep.subr.bf16.mxu0 %v1188_v16  ;;  %v1118_v56 = vpop.eup %1117  ;;  %1021 = vmatprep.subr.bf16.mxu1 %v1188_v16 }
 0x367   : > { %v576_v59 = vmul.f32 %v1118_v56, %v1102_v28 }
 0x368   : > { %988 = vmatmul.mubr.msk.bf16.vlgmr.msra.gmra.mxu0 %vm267_vm2, %v456_v55 }
 0x369   : > { %998 = vmatpush3.bf16.msra.mxu0 %v580_v57  ;;  %999 = vmatprep.mubr.msk.bf16.mxu0 %vm1189_vm1, %v1188_v16 }
 0x36a   : > { %v1120_v58 = vpop.eup %1119  ;;  %1009 = vmatprep.subr.bf16.mxu0 %v1188_v16 }
 0x36b   : > { %v577_v60 = vmul.f32 %v1120_v58, %v1104_v30  ;;  %v779_v30 = vld [vmem:[%s1463_s2] sm:$0xff] }
 0x36d   : > { %v578_v61 = vpack.c.bf16 %v577_v60, %v576_v59 }
 0x36e   : > { %v1122_v0 = vpop.eup %1121 }
 0x36f   : > { %v697_v2 = vmul.f32 %v1122_v0, %v1106_v32  ;;  %v787_v32 = vpack.c.bf16 %v780_v31, %v779_v30 }
 0x370   : > { %1000 = vmatmul.mubr.msk.bf16.vlgmr.msra.gmra.mxu0 %vm267_vm2, %v578_v61 }
 0x371   : > { %1011 = vmatprep.mubr.msk.bf16.mxu0 %vm1189_vm1, %v1188_v16  ;;  %1022 = vmatpush3.bf16.msra.mxu1 %v787_v32 }
 0x391   : > { %v694_v62 = vpop.xlane.xlu1 %693 }
 0x392   : > { %1123 = vrcp.f32 %v694_v62 }
 0x395   : > { %v701_v63 = vpop.permute.xlu1 %700 }
 0x396   : > { %1010 = vmatpush3.bf16.msra.mxu0 %v701_v63 }
 0x39f   : > { %v1124_v1 = vpop.eup %1123 }
 0x3a0   : > { %v698_v3 = vmul.f32 %v1124_v1, %v1108_v37 }
 0x3a2   : > { %v699_v4 = vpack.c.bf16 %v698_v3, %v697_v2 }
 0x3a4   : > { %1012 = vmatmul.mubr.msk.bf16.vlgmr.msra.gmra.mxu0 %vm267_vm2, %v699_v4 }
 0x41f   : > { %v375_v5 = vpop.f32.mrf.mxu0 }
 0x421   : > { %v977_v6 = vpop.f32.mrf.mxu0 }
 0x423   : > { %v378_v7 = vpop.f32.mrf.mxu0 }
 0x425   : > { %v978_v8 = vpop.f32.mrf.mxu0 }
 0x428   : > { %v498_v9 = vpop.f32.mrf.mxu0 }
 0x42a   : > { %v989_v10 = vpop.f32.mrf.mxu0 }
 0x42c   : > { %v501_v11 = vpop.f32.mrf.mxu0 }
 0x42d   : > { %v1078_v15 = vpack.i.bf16 %v501_v11, %v498_v9 }
 0x42e   : > { %v990_v19 = vpop.f32.mrf.mxu0 }
 0x42f   : > { %1079 = vrot.lane.b32.xlu0 %v1078_v15, %s1195_s10 }
 0x430   : > { %v619_v21 = vpop.f32.mrf.mxu0 }
 0x432   : > { %v1001_v24 = vpop.f32.mrf.mxu0 }
 0x434   : > { %v622_v27 = vpop.f32.mrf.mxu0 }
 0x435   : > { %v1083_v28 = vpack.i.bf16 %v622_v27, %v619_v21 }
 0x436   : > { %v1002_v29 = vpop.f32.mrf.mxu0 }
 0x437   : > { %1084 = vrot.lane.b32.xlu1 %v1083_v28, %s1193_s8 }
 0x464   : > { %v740_v33 = vpop.f32.mrf.mxu0 }
 0x466   : > { %v1013_v34 = vpop.f32.mrf.mxu0 }
 0x468   : > { %v743_v35 = vpop.f32.mrf.mxu0 }
 0x469   : > { %v1088_v36 = vpack.i.bf16 %v743_v35, %v740_v33 }
 0x46a   : > { %v1014_v37 = vpop.f32.mrf.mxu0 }
 0x46b   : > { %1089 = vrot.lane.b32.xlu0 %v1088_v36, %s1192_s7  ;;  %s188_s7 = sand.u32 1, %s1177_s16  }
 0x46c   : > { %s925_s8 = sshll.u32 %s188_s7, 4  ;;  %s1421_s30 = scalar_lea.sflag [#allocation3], %s188_s7 }
 0x46d   : > { %s190_s20 = scalar_lea.vmem [#allocation2], %s925_s8 }
 0x46e   : > { %s859_s22 = sshll.u32 %s190_s20, 4  ;;  %s1413_s22 = int_to_ptr.vmem [resolvable:$true] %s859_s22 }
 0x46f   : > { %s1125_s19 = scalar_lea.vmem %s1413_s22, 256  ;;  %p1132_p0 = scmp.lt.s32.totalorder %s1413_s22, %s1130_s6 }
 0x470   : > { %p1126_p11 = scmp.ne.s32.totalorder %s1413_s22, %s1125_s19  ;;  %p1133_p1 = scmp.lt.s32.totalorder %s1131_s9, %s1125_s19 }
 0x472   : > { %p1127_p12 = pnand %p1126_p11, %p1263_p5  ;;  %p1134_p2 = por %p1133_p1, %p1132_p0 }
 0x474   : > { %p1128_p13 = pneg %p1127_p12 }
 0x476   : > { %p1135_p3 = pnand %p1134_p2, %p1128_p13 }
 0x4a1   : > { %v1080_v38 = vpop.permute.xlu0 %1079 }
 0x4a2   : > { %v1082_v16 = vunpack.i.h.bf16 %v1080_v38  ;;  %v1081_v40 = vunpack.i.l.bf16 %v1080_v38 }
 0x4a4   : > { %v772_v44 = vsel %vm267_vm2, %v378_v7, %v1082_v16  ;;  %v771_v45 = vsel %vm267_vm2, %v375_v5, %v1081_v40 }
 0x4a9   : > { %v1085_v39 = vpop.permute.xlu1 %1084 }
 0x4aa   : > { %v1087_v41 = vunpack.i.h.bf16 %v1085_v39  ;;  %v1086_v42 = vunpack.i.l.bf16 %v1085_v39 }
 0x4ac   : > { %v774_v48 = vsel %vm212_vm0, %v772_v44, %v1087_v41  ;;  %v773_v49 = vsel %vm212_vm0, %v771_v45, %v1086_v42 }
 0x4dd   : > { %v1090_v43 = vpop.permute.xlu0 %1089 }
 0x4de   : > { %v1092_v46 = vunpack.i.h.bf16 %v1090_v43  ;;  %v1091_v47 = vunpack.i.l.bf16 %v1090_v43 }
 0x4e0   : > { %v777_v25 = vsel %vm775_vm3, %v774_v48, %v1092_v46  ;;  %v776_v50 = vsel %vm775_vm3, %v773_v49, %v1091_v47 }
 0x4e1   : > { %v778_v51 = vpack.c.bf16 %v777_v25, %v776_v50 }
 0x4e3   : > { %1024 = vmatmul.mubr.msk.bf16.vlgmr.msra.gmra.mxu1 %vm798_vm4, %v778_v51 }
 0x5a3   : > { %v836_v53 = vpop.f32.mrf.mxu1 }
 0x5a4   : > { %v837_v54 = vadd.f32 %v937_v52, %v836_v53 }
 0x5a5   : > { %v1025_v55 = vpop.f32.mrf.mxu1 }
 0x5a6   : > { %843 = vst.msk [vmem:[%s190_s20] sm:$0xff] %vm212_vm0, %v837_v54 }
 0x5a7   : > { %v839_v56 = vpop.f32.mrf.mxu1 }
 0x5a8   : > { %v840_v57 = vadd.f32 %v937_v52, %v839_v56 }
 0x5a9   : > { %v1026_v58 = vpop.f32.mrf.mxu1 }
 0x5aa   : > { %844 = vst.msk [vmem:[%s190_s20 + $0x8] sm:$0xff] %vm212_vm0, %v840_v57 }
 0x5ab   : > { %1138 = shalt.err (!%p1135_p3)
}
 0x5ac   : > { %s1139_s10 = scalar_lea.hbm %s1418_s29, 256  ;;  %s1143_s7 = scalar_lea.hbm %s1465_s4, 512 }
 0x5ad   : > { %p1140_p4 = scmp.ne.s32.totalorder %s1418_s29, %s1139_s10  ;;  %p1144_p9 = scmp.lt.s32.totalorder %s1418_s29, %s1465_s4 }
 0x5ae   : > { %p1145_p10 = scmp.lt.s32.totalorder %s1143_s7, %s1139_s10 }
 0x5af   : > { %p1141_p7 = pnand %p1140_p4, %p1263_p5 }
 0x5b0   : > { %p1146_p11 = por %p1145_p10, %p1144_p9 }
 0x5b1   : > { %p1142_p8 = pneg %p1141_p7 }
 0x5b3   : > { %p1147_p12 = pnand %p1146_p11, %p1142_p8 }
 0x5b5   : > { %1150 = shalt.err (!%p1147_p12)
}
 0x5b6   : > { %s1198_s14 = smov 128   ;;  %s1199_s20 = smov 8  }
 0x5b7   : > { %1027 = dma.vmem_to_hbm [thread:$0]  (%p1263_p5), %s1413_s22, 256, %s1418_s29, %s1421_s30, %s1198_s14, %s1198_s14, %s1199_s20  }
 0x5b8 PF: > { %p1033_p13 = scmp.ge.s32.totalorder %s1185_s18, 2  ;;  %s874_s23 = sand.u32 1, %s1173_s15  }
 0x5b9   : > { %s875_s27 = scalar_lea.sflag [#allocation3], %s874_s23 }
 0x5ba   : > { %p1030_p0 = pnand %p1033_p13, %p1267_p6 }
 0x5bc   : > { %p1031_p1 = pneg %p1030_p0 }
 0x5be   : > { %1168 = dma.done.wait (%p1031_p1), %s875_s27, 256  }
 0x5bf   : > { %1170 = vsyncadd (%p1031_p1), %s875_s27, 4294967040  ;;  %p14_p2 = scmp.ge.s32.totalorder %s1250_s21, 4   ;;  %s1468_s15 = smov %s1177_s16 }
 0x5c0   : > { %s1469_s16 = smov %s1181_s17  ;;  %s1470_s17 = smov %s1261_s24 }
 0x5c1   : > { %s1471_s18 = smov %s1250_s21  ;;  %16 = sbr.rel (!%p14_p2) target bundleno = 3 (0x3), region = 71 }
 0x5c6   :  { %880 = vsyncpa [#allocation3], 1 }
 0x5c7   :  { %882 = vsyncpa [#allocation3 + $0x1], 1 }

</bundles_post_ra>
